<compile_context>
chip_gen: v5e
topology: v5e:2x2
jax: 0.10.0
libtpu: 0.0.40
codegen_flags: <defaults>
</compile_context>

<pallas_src>
import functools
import math

import numpy as np
import jax
import jax.numpy as jnp
from jax.experimental import pallas as pl
from jax.experimental.pallas import tpu as pltpu


def _round_up(x: int, m: int) -> int:
    return ((x + m - 1) // m) * m


def _sinusoid_kernel(x_ref, m_ref, off_ref, o_ref, *, use_mxu: bool):
    # x_ref:   (tile_rows, pack) f32  pack consecutive time values per output row
    # m_ref:   (pack, W) f32          lane-group one-hot masks with 1/scale folded in
    # off_ref: (1, W) f32             phase offset: 0 on even lanes (sin), pi/2 on odd (cos)
    # o_ref:   (tile_rows, W) f32     lane-dense output slab
    x = x_ref[...]
    if use_mxu:
        # Spread x[r, j] across its D-lane group and apply 1/scale on the otherwise-idle MXU.
        phases = jnp.dot(x, m_ref[...], preferred_element_type=jnp.float32)
    else:
        # pack == 1: rank-1 broadcast multiply on the VPU (one mul per element).
        phases = x * m_ref[...]
    # cos(x) == sin(x + pi/2): a single EUP transcendental per output element.
    o_ref[...] = jnp.sin(phases + off_ref[...])


def time_sinusoid_coding(inputs: jax.Array, num_units: int) -> jax.Array:
    """Pallas TPU implementation of TimeSinusoidCoding.forward.

    inputs: (B, T) array (any real dtype; cast to float32 like the torch module).
    returns: (B, T, num_units) float32.
    """
    assert inputs.ndim == 2, "the tensor rank should be 2."
    assert num_units % 2 == 0
    B, T = inputs.shape
    D = num_units
    N = B * T

    # Choose pack so that W = pack * D is a multiple of 128 (lane-dense stores) AND pack
    # divides N (so every reshape is pure metadata: no padding, no post-kernel copy).
    p0 = 128 // math.gcd(D, 128)
    pack = 1
    p = p0
    while p <= 64:
        if N % p == 0:
            pack = p
            break
        p += p0
    # TODO(synk): if no pack <= 64 divides N and D % 128 != 0 we fall back to pack=1 with
    # masked partial stores (slower store path) rather than re-introducing the output copy.
    W = pack * D
    Nr = N // pack

    # Deterministic "parameters" (same as torch __init__), with 1/scale folded into the
    # expansion matrix and the sin-with-phase-offset trick for cos.
    scale = np.power(10000.0, np.arange(0, D, 2) * 1.0 / D)
    inv_d = np.repeat(1.0 / scale, 2).astype(np.float32)                         # (D,)
    off_d = np.where(np.arange(D) % 2 == 0, 0.0, np.pi / 2).astype(np.float32)   # (D,)
    off_w = jnp.asarray(np.tile(off_d, pack)[None, :])                           # (1, W)
    if pack == 1:
        m_np = inv_d[None, :]                                                    # (1, D)
    else:
        grp = np.arange(W) // D                                                  # lane -> group
        onehot = (grp[None, :] == np.arange(pack)[:, None]).astype(np.float32)   # (pack, W)
        m_np = onehot * np.tile(inv_d, pack)[None, :]                            # (pack, W)
    m = jnp.asarray(m_np)

    # Row tiling of the (Nr, W) lane-dense view: ~8 MiB output blocks (double-buffered
    # 16 MiB fits the explicit 40 MiB vmem limit on every generation), but keep >= ~8 grid
    # steps so both v7x cores get work and the pipeline stays full on small/medium N.
    cap_rows = max(8, ((8 * 1024 * 1024) // (W * 4)) // 8 * 8)
    rows_for_steps = max(8, _round_up(pl.cdiv(Nr, 8), 8))
    tile_rows = min(cap_rows, rows_for_steps)
    grid = (pl.cdiv(Nr, tile_rows),)

    x2 = inputs.astype(jnp.float32).reshape(Nr, pack)   # pure metadata reshape

    out = pl.pallas_call(
        functools.partial(_sinusoid_kernel, use_mxu=(pack > 1)),
        out_shape=jax.ShapeDtypeStruct((Nr, W), jnp.float32),
        grid_spec=pltpu.PrefetchScalarGridSpec(
            num_scalar_prefetch=0,
            grid=grid,
            in_specs=[
                pl.BlockSpec((tile_rows, pack), lambda i: (i, 0)),
                pl.BlockSpec((m.shape[0], W), lambda i: (0, 0)),   # resident constant
                pl.BlockSpec((1, W), lambda i: (0, 0)),            # resident constant
            ],
            out_specs=pl.BlockSpec((tile_rows, W), lambda i: (i, 0)),
        ),
        compiler_params=pltpu.CompilerParams(
            dimension_semantics=("parallel",),
            vmem_limit_bytes=40 * 1024 * 1024,
        ),
        cost_estimate=pl.CostEstimate(
            flops=int(Nr) * W * (2 * pack + 1),
            transcendentals=int(Nr) * W,
            bytes_accessed=4 * (int(Nr) * (pack + W) + (m.shape[0] + 1) * W),
        ),
    )(x2, m, off_w)

    # Pure metadata reshape: Nr * W == N * D, no slice, no copy.
    return out.reshape(B, T, D)


def _reference(inputs: np.ndarray, num_units: int) -> np.ndarray:
    """Pure-numpy port of the torch forward for verification."""
    B, T = inputs.shape
    D = num_units
    scale = np.power(10000.0, np.arange(0, D, 2) * 1.0 / D).astype(np.float32)   # (D//2,)
    x = inputs.astype(np.float32)[:, :, None] / scale[None, None, :]             # (B,T,D//2)
    code_even = np.sin(x)
    code_odd = np.cos(x)
    tcoding = np.stack([code_even, code_odd], axis=-1)                           # (B,T,D//2,2)
    return tcoding.reshape(B, T, D)


if __name__ == "__main__":
    B, T, D = 2, 8, 32
    key = jax.random.PRNGKey(0)
    # Time-step-like inputs (non-negative floats).
    inputs = jax.random.uniform(key, (B, T), dtype=jnp.float32, minval=0.0, maxval=100.0)

    out = time_sinusoid_coding(inputs, D)
    out = jax.block_until_ready(out)

    ref = _reference(np.asarray(inputs), D)
    # atol slightly loosened vs f32 eps: cos realised as sin(x + pi/2) adds a few-ulp angle
    # rounding at phases up to ~100; still catches any scale/interleave/offset bug.
    np.testing.assert_allclose(np.asarray(out), ref, rtol=1e-5, atol=2e-5)
    assert out.shape == (B, T, D) and out.dtype == jnp.float32

    print("KERNEL_OK")
</pallas_src>

<mosaic_0001>
module attributes {stable_mosaic.version = 11 : i64} {
  func.func @_sinusoid_kernel(%arg0: i32, %arg1: memref<8x4xf32, #tpu.memory_space<vmem>>, %arg2: memref<4x128xf32, #tpu.memory_space<vmem>>, %arg3: memref<1x128xf32, #tpu.memory_space<vmem>>, %arg4: memref<8x128xf32, #tpu.memory_space<vmem>>) attributes {dimension_semantics = [#tpu.dimension_semantics<parallel>], iteration_bounds = array<i64: 1>, scalar_prefetch = 0 : i64, scratch_operands = 0 : i64, tpu.core_type = #tpu.core_type<tc>, window_params = [{transform_indices = @transform_0, window_bounds = array<i64: 8, 4>}, {pipeline_mode = #tpu.pipeline_mode<synchronous>, transform_indices = @transform_1, window_bounds = array<i64: 4, 128>}, {pipeline_mode = #tpu.pipeline_mode<synchronous>, transform_indices = @transform_2, window_bounds = array<i64: 1, 128>}, {transform_indices = @transform_3, window_bounds = array<i64: 8, 128>}]} {
    %c0 = arith.constant 0 : index
    %c0_0 = arith.constant 0 : index
    %0 = vector.load %arg1[%c0, %c0_0] : memref<8x4xf32, #tpu.memory_space<vmem>>, vector<8x4xf32>
    %c0_1 = arith.constant 0 : index
    %c0_2 = arith.constant 0 : index
    %1 = vector.load %arg2[%c0_1, %c0_2] : memref<4x128xf32, #tpu.memory_space<vmem>>, vector<4x128xf32>
    %cst = arith.constant dense<0.000000e+00> : vector<8x128xf32>
    %2 = tpu.matmul %0, %1, %cst {dimension_numbers = #tpu.dot_dimension_numbers<[1], [0], [0], [1], [0, 0, 1, 1], [], []>} : vector<8x4xf32>, vector<4x128xf32>, vector<8x128xf32> -> vector<8x128xf32>
    %c0_3 = arith.constant 0 : index
    %c0_4 = arith.constant 0 : index
    %3 = vector.load %arg3[%c0_3, %c0_4] : memref<1x128xf32, #tpu.memory_space<vmem>>, vector<1x128xf32>
    %4 = vector.broadcast %3 : vector<1x128xf32> to vector<8x128xf32>
    %5 = arith.addf %2, %4 : vector<8x128xf32>
    %6 = math.sin %5 : vector<8x128xf32>
    %c0_5 = arith.constant 0 : index
    %c0_6 = arith.constant 0 : index
    %7 = vector.load %arg4[%c0_5, %c0_6] : memref<8x128xf32, #tpu.memory_space<vmem>>, vector<8x128xf32>
    tpu.vector_store %arg4[%c0_5, %c0_6], %6 {strides = array<i32>} : memref<8x128xf32, #tpu.memory_space<vmem>>, vector<8x128xf32>,
    return
  }
  func.func @transform_0(%arg0: i32) -> (i32, i32) {
    %c0_i32 = arith.constant 0 : i32
    %c0_i32_0 = arith.constant 0 : i32
    return %arg0, %c0_i32 : i32, i32
  }
  func.func @transform_1(%arg0: i32) -> (i32, i32) {
    %c0_i32 = arith.constant 0 : i32
    %c0_i32_0 = arith.constant 0 : i32
    %c0_i32_1 = arith.constant 0 : i32
    return %c0_i32, %c0_i32_0 : i32, i32
  }
  func.func @transform_2(%arg0: i32) -> (i32, i32) {
    %c0_i32 = arith.constant 0 : i32
    %c0_i32_0 = arith.constant 0 : i32
    %c0_i32_1 = arith.constant 0 : i32
    return %c0_i32, %c0_i32_0 : i32, i32
  }
  func.func @transform_3(%arg0: i32) -> (i32, i32) {
    %c0_i32 = arith.constant 0 : i32
    %c0_i32_0 = arith.constant 0 : i32
    return %arg0, %c0_i32 : i32, i32
  }
}

</mosaic_0001>

<bundles_post_ra>
// kernel: tpu_custom_call.1
= control target key start
LH: loop header
LB: loop body
LE: loop exit
PB: predicated region body
PF: predicated region fallthrough
CT: control target
= control target key end

     0   :  { %8 = vsyncpa [#allocation3], 0  ;;  %s457_s0 = inlined_call_operand.hbm [shape: f32[4,4], index: 0, kind: input, shape index: {}]   ;;  %s458_s1 = inlined_call_operand.hbm [shape: f32[4,128], index: 1, kind: input, shape index: {}]   ;;  %s459_s2 = inlined_call_operand.vmem [shape: f32[1,128], index: 2, kind: input, shape index: {}]   ;;  %s460_s3 = inlined_call_operand.hbm [shape: f32[4,128], index: 3, kind: output, shape index: {}]  }
   0x1   :  { %9 = vsyncpa [#allocation6], 0 }
   0x2   :  { %10 = vsyncpa [#allocation4], 0 }
   0x3   :  { %14 = vsyncadd [#allocation3], 64  ;;  %s15_s14 = sshll.u32 %s457_s0, 4  ;;  %s351_s15 = smov [#allocation2]   ;;  %s16_s14 = int_to_ptr.hbm [resolvable:$true] %s15_s14 }
   0x4   :  { %s17_s16 = sshll.u32 %s351_s15, 4  ;;  %s29_s19 = sshll.u32 %s458_s1, 4  ;;  %s18_s16 = int_to_ptr.vmem [resolvable:$true] %s17_s16  ;;  %s30_s19 = int_to_ptr.hbm [resolvable:$true] %s29_s19 }
   0x5   :  { %s352_s20 = smov 64   ;;  %s353_s21 = smov 4  }
   0x6   :  { %23 = dma.hbm_to_vmem [thread:$0]  %s16_s14, 64, %s18_s16, [#allocation3], %s352_s20, %s352_s20, %s353_s21  }
   0x7   :  { %s354_s22 = smov [#allocation5]  }
   0x8   :  { %s31_s23 = sshll.u32 %s354_s22, 4  ;;  %s32_s23 = int_to_ptr.vmem [resolvable:$true] %s31_s23 }
   0x9   :  { %34 = dma.hbm_to_vmem [thread:$0]  %s30_s19, 64, %s32_s23, [#allocation6]  }
   0xa   :  { %345 = dma.done.wait [#allocation3], 128  }
   0xb   :  { %346 = vsyncadd [#allocation3], 4294967168 }
   0xc   :  { %347 = dma.done.wait [#allocation6], 64  }
   0xd   :  { %348 = vsyncadd [#allocation6], 4294967232  ;;  %vm55_vm0 = vcmask 1043456   ;;  %vm51_vm1 = vcmask 31744   ;;  %v46_v0 = vld [vmem:[#allocation5] sm:$0xf] }
   0xe   :  { %v45_v1 = vld [vmem:[#allocation2] sm:$0xff]  ;;  %255 = vmatpush.msk.msra.mxu0 %vm55_vm0, %v46_v0  ;;  %v355_v16 = vmov 683565275   ;;  %v356_v18 = vmov 2475754826   ;;  %v361_v0 = vmov 0  }
   0xf   :  { %256 = vmatmul.msk.f32.vlgmr.msra.gmra.mxu0 %vm51_vm1, %v45_v1  ;;  %v272_v2 = vld [vmem:[%s459_s2] ss:$0 sm:$0xff]  ;;  %v357_v21 = vmov 2131351028   ;;  %v358_v24 = vmov 2102212464  }
  0x10   :  { %v359_v27 = vmov 920167782   ;;  %v360_v30 = vmov 1326507024  }
  0x8c   :  { %v76_v3 = vpop.f32.mrf.mxu0 }
  0x8d   :  { %v395_v4 = vadd.f32 %v272_v2, %v76_v3 }
  0x8f   :  { %v82_v5 = vand.u32 2139095040, %v395_v4  ;;  %v79_v8 = vand.u32 2147483647, %v395_v4  ;;  %vm81_vm14 = vcmp.lt.s32.totalorder %v395_v4, 0 }
  0x91   :  { %v83_v6 = vshrl.u32 %v82_v5, 23  ;;  %v86_v10 = vand.u32 8388607, %v79_v8  ;;  %vm80_vm15 = vcmp.le.f32.partialorder %v79_v8, 0.7853982 }
  0x93   :  { %v257_v7 = vadd.s32 4294967169, %v83_v6  ;;  %v87_v14 = vor.u32 8388608, %v86_v10 }
  0x95   :  { %v89_v9 = vadd.s32 1, %v257_v7  ;;  %v412_v37 = vshll.u32 %v87_v14, 8 }
  0x97   :  { %vm90_vm2 = vcmp.gt.s32.totalorder %v89_v9, 0  ;;  %v128_v46 = vand.u32 65535, %v412_v37  ;;  %v129_v47 = vshrl.u32 %v412_v37, 16 }
  0x98   :  { %v91_v11 = vsel %vm90_vm2, %v89_v9, 0 }
  0x99   :  { %v93_v12 = vand.u32 31, %v91_v11  ;;  %v403_v15 = vshrl.u32 %v91_v11, 5 }
  0x9b   :  { %v401_v13 = vsub.s32 32, %v93_v12  ;;  %v96_v17 = vshll.u32 %v355_v16, %v93_v12  ;;  %v99_v19 = vshll.u32 %v356_v18, %v93_v12  ;;  %v102_v23 = vshll.u32 %v357_v21, %v93_v12 }
  0x9c   :  { %v105_v26 = vshll.u32 %v358_v24, %v93_v12  ;;  %v108_v29 = vshll.u32 %v359_v27, %v93_v12  ;;  %vm111_vm3 = vcmp.lt.s32.totalorder %v403_v15, 1  ;;  %vm114_vm4 = vcmp.lt.s32.totalorder %v403_v15, 4 }
  0x9d   :  { %v97_v20 = vshrl.u32 %v356_v18, %v401_v13  ;;  %v100_v22 = vshrl.u32 %v357_v21, %v401_v13  ;;  %v103_v25 = vshrl.u32 %v358_v24, %v401_v13  ;;  %v106_v28 = vshrl.u32 %v359_v27, %v401_v13 }
  0x9e   :  { %v109_v31 = vshrl.u32 %v360_v30, %v401_v13  ;;  %vm113_vm5 = vcmp.lt.s32.totalorder %v403_v15, 3  ;;  %vm112_vm6 = vcmp.lt.s32.totalorder %v403_v15, 2  ;;  %v95_v11 = vshrl.u32 %v355_v16, %v401_v13 }
  0x9f   :  { %v98_v32 = vor.u32 %v97_v20, %v96_v17  ;;  %v101_v33 = vor.u32 %v100_v22, %v99_v19  ;;  %v104_v34 = vor.u32 %v103_v25, %v102_v23  ;;  %v107_v35 = vor.u32 %v106_v28, %v105_v26 }
  0xa0   :  { %v110_v36 = vor.u32 %v109_v31, %v108_v29 }
  0xa1   :  { %v119_v38 = vsel %vm111_vm3, %v98_v32, %v101_v33  ;;  %v123_v39 = vsel %vm111_vm3, %v101_v33, %v104_v34  ;;  %v120_v40 = vsel %vm114_vm4, %v107_v35, 920167782  ;;  %v116_v7 = vsel %vm114_vm4, %v104_v34, 2102212464 }
  0xa2   :  { %v124_v41 = vsel %vm114_vm4, %v110_v36, 1326507024  ;;  %v121_v42 = vsel %vm113_vm5, %v104_v34, %v120_v40  ;;  %v115_v20 = vsel %vm111_vm3, %v95_v11, %v98_v32  ;;  %v117_v21 = vsel %vm113_vm5, %v101_v33, %v116_v7 }
  0xa3   :  { %v125_v43 = vsel %vm113_vm5, %v107_v35, %v124_v41  ;;  %v122_v44 = vsel %vm112_vm6, %v119_v38, %v121_v42  ;;  %v118_v13 = vsel %vm112_vm6, %v115_v20, %v117_v21  ;;  %vm222_vm3 = vweird.f32 %v395_v4 }
  0xa4   :  { %v126_v45 = vsel %vm112_vm6, %v123_v39, %v125_v43  ;;  %v152_v50 = vand.u32 65535, %v122_v44  ;;  %v153_v51 = vshrl.u32 %v122_v44, 16  ;;  %v172_v29 = vmul.u32 %v412_v37, %v118_v13 }
  0xa5   :  { %v130_v48 = vand.u32 65535, %v126_v45  ;;  %v131_v49 = vshrl.u32 %v126_v45, 16 }
  0xa6   :  { %v155_v54 = vmul.u32 %v153_v51, %v128_v46  ;;  %v156_v55 = vmul.u32 %v152_v50, %v129_v47  ;;  %v154_v59 = vmul.u32 %v152_v50, %v128_v46  ;;  %v157_v63 = vmul.u32 %v153_v51, %v129_v47 }
  0xa7   :  { %v133_v52 = vmul.u32 %v131_v49, %v128_v46  ;;  %v134_v53 = vmul.u32 %v130_v48, %v129_v47  ;;  %v132_v56 = vmul.u32 %v130_v48, %v128_v46  ;;  %v135_v58 = vmul.u32 %v131_v49, %v129_v47 }
  0xa8   :  { %v158_v60 = vshll.u32 %v155_v54, 16  ;;  %v160_v2 = vshll.u32 %v156_v55, 16  ;;  %v159_v18 = vshrl.u32 %v155_v54, 16  ;;  %v161_v24 = vshrl.u32 %v156_v55, 16 }
  0xa9   :  { %v136_v57 = vshll.u32 %v133_v52, 16  ;;  %v138_v61 = vshll.u32 %v134_v53, 16  ;;  %v137_v12 = vshrl.u32 %v133_v52, 16  ;;  %v139_v22 = vshrl.u32 %v134_v53, 16 }
  0xaa   :  { %vm162_vm8 = vc.u32 %v154_v59, %v158_v60  ;;  %v164_v3 = vadd.s32 %v158_v60, %v154_v59 }
  0xab   :  { %vm140_vm7 = vc.u32 %v132_v56, %v136_v57  ;;  %v142_v62 = vadd.s32 %v136_v57, %v132_v56  ;;  %v163_v6 = vsel %vm162_vm8, 1, %v361_v0 }
  0xac   :  { %v141_v1 = vsel %vm140_vm7, 1, %v361_v0  ;;  %v165_v10 = vadd.s32 %v163_v6, %v157_v63  ;;  %vm166_vm10 = vc.u32 %v164_v3, %v160_v2  ;;  %v168_v27 = vadd.s32 %v164_v3, %v160_v2 }
  0xad   :  { %v143_v5 = vadd.s32 %v141_v1, %v135_v58  ;;  %vm144_vm9 = vc.u32 %v142_v62, %v138_v61  ;;  %v167_v17 = vsel %vm166_vm10, 1, %v361_v0 }
  0xae   :  { %v145_v9 = vsel %vm144_vm9, 1, %v361_v0  ;;  %v169_v19 = vadd.s32 %v167_v17, %v165_v10 }
  0xaf   :  { %v147_v14 = vadd.s32 %v145_v9, %v143_v5 }
  0xb0   :  { %v170_v25 = vadd.s32 %v169_v19, %v159_v18 }
  0xb1   :  { %v148_v23 = vadd.s32 %v147_v14, %v137_v12 }
  0xb2   :  { %v171_v16 = vadd.s32 %v170_v25, %v161_v24 }
  0xb3   :  { %v149_v26 = vadd.s32 %v148_v23, %v139_v22 }
  0xb4   :  { %v175_v28 = vadd.s32 1, %v171_v16 }
  0xb5   :  { %vm174_vm11 = vc.u32 %v149_v26, %v168_v27  ;;  %v173_v15 = vadd.s32 %v168_v27, %v149_v26 }
  0xb6   :  { %v176_v30 = vsel %vm174_vm11, %v175_v28, %v171_v16 }
  0xb7   :  { %v177_v31 = vadd.s32 %v176_v30, %v172_v29 }
  0xb9   :  { %v178_v32 = vadd.s32 536870912, %v177_v31 }
  0xbb   :  { %v179_v34 = vshrl.u32 %v178_v32, 30 }
  0xbd   :  { %v180_v35 = vshll.u32 %v179_v34, 30  ;;  %v203_v54 = vsub.s32 4, %v179_v34 }
  0xbf   :  { %v181_v33 = vsub.s32 %v177_v31, %v180_v35  ;;  %v204_v59 = vsel %vm81_vm14, %v203_v54, %v179_v34 }
  0xc0   :  { %v206_v62 = vsel %vm80_vm15, 0, %v204_v59 }
  0xc1   :  { %vm182_vm12 = vcmp.lt.s32.totalorder %v181_v33, 0  ;;  %v183_v36 = vsub.s32 0, %v181_v33  ;;  %v223_v3 = vadd.s32 3, %v206_v62 }
  0xc3   :  { %v184_v38 = vsel %vm182_vm12, %v183_v36, %v181_v33  ;;  %v224_v9 = vand.u32 3, %v223_v3 }
  0xc4   :  { %v185_v39 = vclz %v184_v38 }
  0xc5   :  { %vm226_vm0 = vcmp.eq.s32.totalorder %v224_v9, 0  ;;  %vm229_vm1 = vcmp.eq.s32.totalorder %v224_v9, 2  ;;  %vm225_vm2 = vcmp.lt.s32.totalorder %v224_v9, 2 }
  0xc6   :  { %v258_v40 = vadd.s32 4294967294, %v185_v39 }
  0xc8   :  { %vm259_vm13 = vcmp.lt.s32.totalorder %v258_v40, 0 }
  0xc9   :  { %v188_v41 = vsel %vm259_vm13, 0, %v258_v40 }
  0xca   :  { %v189_v42 = vsub.s32 32, %v188_v41  ;;  %v193_v43 = vsub.s32 4294967266, %v188_v41  ;;  %v190_v44 = vshll.u32 %v181_v33, %v188_v41 }
  0xcc   :  { %v191_v45 = vshrl.u32 %v173_v15, %v189_v42  ;;  %v194_v46 = vadd.s32 127, %v193_v43 }
  0xce   :  { %v192_v37 = vor.u32 %v191_v45, %v190_v44  ;;  %v195_v47 = vshll.u32 %v194_v46, 23 }
  0xd0   :  { %v196_v48 = vor.u32 4788187, %v195_v47  ;;  %v199_v50 = vcvt.s32.f32 %v192_v37 }
  0xd2   :  { %v197_v49 = vand.u32 2147483647, %v196_v48 }
  0xd4   :  { %v200_v51 = vmul.f32 %v199_v50, %v197_v49 }
  0xd6   :  { %v201_v52 = vxor.u32 2147483648, %v200_v51 }
  0xd8   :  { %v202_v53 = vsel %vm81_vm14, %v201_v52, %v200_v51 }
  0xd9   :  { %v205_v55 = vsel %vm80_vm15, %v395_v4, %v202_v53 }
  0xda   :  { %v207_v56 = vmul.f32 %v205_v55, %v205_v55 }
  0xdc   :  { %v208_v57 = vmul.f32 -0.001358992, %v207_v56  ;;  %v215_v58 = vmul.f32 -0.00019511016, %v207_v56 }
  0xde   :  { %v209_v60 = vadd.f32 0.041655596, %v208_v57  ;;  %v216_v61 = vadd.f32 0.008332121, %v215_v58 }
  0xe0   :  { %v210_v63 = vmul.f32 %v209_v60, %v207_v56  ;;  %v217_v0 = vmul.f32 %v216_v61, %v207_v56 }
  0xe2   :  { %v211_v1 = vadd.f32 -0.4999988, %v210_v63  ;;  %v218_v2 = vadd.f32 -0.16666654, %v217_v0 }
  0xe4   :  { %v212_v5 = vmul.f32 %v211_v1, %v207_v56  ;;  %v219_v6 = vmul.f32 %v218_v2, %v207_v56 }
  0xe6   :  { %v213_v7 = vadd.f32 1.0, %v212_v5  ;;  %v220_v8 = vadd.f32 1.0, %v219_v6 }
  0xe8   :  { %v221_v10 = vmul.f32 %v220_v8, %v205_v55  ;;  %v230_v11 = vxor.u32 2147483648, %v213_v7 }
  0xea   :  { %v227_v12 = vxor.u32 2147483648, %v221_v10  ;;  %v231_v17 = vsel %vm229_vm1, %v230_v11, %v221_v10 }
  0xec   :  { %v228_v14 = vsel %vm226_vm0, %v213_v7, %v227_v12 }
  0xed   :  { %v232_v18 = vsel %vm225_vm2, %v228_v14, %v231_v17 }
  0xee   :  { %v233_v19 = vsel %vm222_vm3, nan, %v232_v18 }
  0xef   :  { %234 = vst [vmem:[#allocation7] sm:$0xff] %v233_v19 }
  0xf0   :  { %238 = vsyncadd [#allocation4], 64  ;;  %s241_s25 = sshll.u32 %s460_s3, 4  ;;  %s362_s26 = smov [#allocation7]   ;;  %s242_s25 = int_to_ptr.hbm [resolvable:$true] %s241_s25 }
  0xf1   :  { %s239_s27 = sshll.u32 %s362_s26, 4  ;;  %s240_s27 = int_to_ptr.vmem [resolvable:$true] %s239_s27 }
  0xf2   :  { %247 = dma.vmem_to_hbm [thread:$0]  %s240_s27, 64, %s242_s25, [#allocation4], %s352_s20, %s352_s20, %s353_s21  }
  0xf3   :  { %349 = dma.done.wait [#allocation4], 128  }
  0xf4   :  { %350 = vsyncadd [#allocation4], 4294967168 }
  0xf5   :  { %252 = vsyncpa [#allocation3], 1 }
  0xf6   :  { %253 = vsyncpa [#allocation6], 1 }
  0xf7   :  { %254 = vsyncpa [#allocation4], 1 }

</bundles_post_ra>
